<compile_context>
chip_gen: v7x
topology: tpu7x:2x2x1
jax: 0.10.0
libtpu: 0.0.40
codegen_flags: <defaults>
</compile_context>

<pallas_src>
import math
import jax
import jax.numpy as jnp
from jax.experimental import pallas as pl
from jax.experimental.pallas import tpu as pltpu


# ----------------------------- parameter construction (glue, plain JAX) -----------------------------

def _round_up(x, m):
    return ((x + m - 1) // m) * m


def _hz_to_mel_htk(f):
    return 2595.0 * jnp.log10(1.0 + f / 700.0)


def _mel_to_hz_htk(m):
    return 700.0 * (10.0 ** (m / 2595.0) - 1.0)


def melscale_fbanks(n_freqs, f_min, f_max, n_mels, sample_rate):
    """HTK-scale triangular mel filterbank, shape [n_freqs, n_mels] (torchaudio convention)."""
    all_freqs = jnp.linspace(0.0, sample_rate / 2.0, n_freqs)
    m_min = _hz_to_mel_htk(jnp.asarray(f_min, jnp.float32))
    m_max = _hz_to_mel_htk(jnp.asarray(f_max, jnp.float32))
    m_pts = jnp.linspace(m_min, m_max, n_mels + 2)
    f_pts = _mel_to_hz_htk(m_pts)                              # [n_mels + 2]
    f_diff = f_pts[1:] - f_pts[:-1]                            # [n_mels + 1]
    slopes = f_pts[None, :] - all_freqs[:, None]               # [n_freqs, n_mels + 2]
    down = -slopes[:, :-2] / f_diff[:-1]
    up = slopes[:, 2:] / f_diff[1:]
    fb = jnp.maximum(0.0, jnp.minimum(down, up))
    return fb.astype(jnp.float32)                              # [n_freqs, n_mels]


def create_dct(n_mfcc, n_mels, norm="ortho"):
    """torchaudio.functional.create_dct -> [n_mels, n_mfcc]."""
    n = jnp.arange(n_mels, dtype=jnp.float32)
    k = jnp.arange(n_mfcc, dtype=jnp.float32)[:, None]
    dct = jnp.cos(math.pi / n_mels * (n + 0.5) * k)            # [n_mfcc, n_mels]
    if norm is None:
        dct = dct * 2.0
    else:  # 'ortho'
        dct = dct.at[0].multiply(1.0 / math.sqrt(2.0))
        dct = dct * math.sqrt(2.0 / n_mels)
    return dct.T.astype(jnp.float32)                           # [n_mels, n_mfcc]


# ----------------------------------------- Pallas kernels -------------------------------------------

def _melspec_db_kernel(frames_ref, cs_ref, mel_ref, db_ref, max_ref):
    """[TILE_F, n_fft] frames -> power spectrogram -> mel -> dB, plus per-batch running max.

    cs_ref holds the Hann-windowed DFT cos|sin bases fused side-by-side: [n_fft, 2*F_pad].
    Padded frequency / mel columns are zero, so they contribute 0 power and exactly -100 dB
    (== the amin clamp floor), leaving the running max untouched.
    """
    @pl.when(pl.program_id(1) == 0)
    def _():
        max_ref[...] = jnp.full_like(max_ref, -jnp.inf)

    cs = jnp.dot(frames_ref[...], cs_ref[...],
                 preferred_element_type=jnp.float32)            # [TILE_F, 2*F_pad]
    fpad = cs.shape[-1] // 2                                    # 128-aligned split (cheap)
    re = cs[:, :fpad]
    im = cs[:, fpad:]
    power = re * re + im * im                                   # |STFT|^2
    mel = jnp.dot(power, mel_ref[...],
                  preferred_element_type=jnp.float32)           # [TILE_F, M_pad]
    # AmplitudeToDB('power'): 10*log10(clamp(x, amin=1e-10)); ref=1.0 -> db_multiplier term is 0.
    db = (10.0 / jnp.log(10.0)) * jnp.log(jnp.maximum(mel, 1e-10))
    db_ref[...] = db
    max_ref[...] = jnp.maximum(max_ref[...], jnp.max(db))


def _mfcc_kernel(floor_ref, db_ref, dct_ref, out_ref):
    """top_db clamp (per-batch scalar floor from SMEM) + DCT projection [TILE_F, M_pad]@[M_pad, C_pad]."""
    b = pl.program_id(0)
    db = jnp.maximum(db_ref[...], floor_ref[b])
    out_ref[...] = jnp.dot(db, dct_ref[...], preferred_element_type=jnp.float32)


# -------------------------------------------- wrapper -----------------------------------------------

def mfcc(waveform, *, n_mels=64, num_frequencies=129, window_length=256,
         hop_length=None, n_mfcc=32, sample_rate=16000.0, top_db=80.0):
    """waveform [B, T] float32 -> MFCC [B, n_mfcc, n_frames] float32."""
    waveform = waveform.astype(jnp.float32)
    B, T = waveform.shape
    hop = hop_length if hop_length is not None else window_length // 2
    n_fft = 2 * (num_frequencies - 1)

    # --- framing (glue). TODO(synk): reference MelSpectrogram internals are unspecified;
    # we use center=False framing with a Hann window (zero-padded to n_fft), HTK mel scale.
    n_frames = 1 + (T - n_fft) // hop

    # padded / tiled geometry: lane dims -> multiples of 128, sublane (rows) -> multiple of 8.
    F_pad = _round_up(num_frequencies, 128)                     # 129 -> 256
    M_pad = _round_up(n_mels, 128)                              # 64  -> 128
    C_pad = _round_up(n_mfcc, 128)                              # 32  -> 128
    tile_f = min(256, _round_up(n_frames, 8))                   # rows per grid step
    nf_pad = _round_up(n_frames, tile_f)
    n_tiles = nf_pad // tile_f

    idx = jnp.arange(n_frames)[:, None] * hop + jnp.arange(n_fft)[None, :]   # [n_frames, n_fft]
    frames = waveform[:, idx]                                                 # [B, n_frames, n_fft]
    frames = jnp.pad(frames, ((0, 0), (0, nf_pad - n_frames), (0, 0)))        # [B, nf_pad, n_fft]
    # TODO(synk): the overlap gather duplicates the waveform ~2x in HBM; an in-kernel framing
    # path (manual DMA of raw waveform tiles, memory_space=pl.ANY) would halve kernel-1 input bytes.

    # --- bases: fold the analysis window into the DFT matrices; fuse cos|sin into one padded RHS.
    win = jnp.concatenate([
        0.5 * (1.0 - jnp.cos(2.0 * jnp.pi * jnp.arange(window_length) / window_length)),
        jnp.zeros((n_fft - window_length,), jnp.float32),
    ]).astype(jnp.float32)                                                    # [n_fft]
    n = jnp.arange(n_fft, dtype=jnp.float32)[:, None]
    k = jnp.arange(num_frequencies, dtype=jnp.float32)[None, :]
    ang = 2.0 * jnp.pi * n * k / n_fft
    cs = jnp.zeros((n_fft, 2 * F_pad), jnp.float32)
    cs = cs.at[:, :num_frequencies].set(win[:, None] * jnp.cos(ang))
    cs = cs.at[:, F_pad:F_pad + num_frequencies].set(win[:, None] * jnp.sin(ang))

    mel_fb = jnp.zeros((F_pad, M_pad), jnp.float32)
    mel_fb = mel_fb.at[:num_frequencies, :n_mels].set(
        melscale_fbanks(num_frequencies, 0.0, sample_rate / 2.0, n_mels, sample_rate))
    dct_mat = jnp.zeros((M_pad, C_pad), jnp.float32)
    dct_mat = dct_mat.at[:n_mels, :n_mfcc].set(create_dct(n_mfcc, n_mels, norm="ortho"))

    # --- kernel 1: power spectrogram + mel projection + dB, plus per-batch running max of dB.
    db_pad, db_max = pl.pallas_call(
        _melspec_db_kernel,
        out_shape=(jax.ShapeDtypeStruct((B, nf_pad, M_pad), jnp.float32),
                   jax.ShapeDtypeStruct((B, 8, 128), jnp.float32)),
        grid=(B, n_tiles),
        in_specs=[
            pl.BlockSpec((None, tile_f, n_fft), lambda b, t: (b, t, 0)),
            pl.BlockSpec((n_fft, 2 * F_pad), lambda b, t: (0, 0)),
            pl.BlockSpec((F_pad, M_pad), lambda b, t: (0, 0)),
        ],
        out_specs=[
            pl.BlockSpec((None, tile_f, M_pad), lambda b, t: (b, t, 0)),
            pl.BlockSpec((None, 8, 128), lambda b, t: (b, 0, 0)),   # accumulator across t
        ],
        compiler_params=pltpu.CompilerParams(
            dimension_semantics=("parallel", "arbitrary")),
    )(frames, cs, mel_fb)

    # --- top_db floor per batch element (from the tiny per-batch max, not the full dB array)
    floor = db_max[:, 0, 0] - top_db                                          # [B] f32

    # --- kernel 2: clamp + DCT matmul (floor comes in via SMEM scalars)
    mfcc_pad = pl.pallas_call(
        _mfcc_kernel,
        out_shape=jax.ShapeDtypeStruct((B, nf_pad, C_pad), jnp.float32),
        grid=(B, n_tiles),
        in_specs=[
            pl.BlockSpec(memory_space=pltpu.MemorySpace.SMEM),                # floor [B]
            pl.BlockSpec((None, tile_f, M_pad), lambda b, t: (b, t, 0)),
            pl.BlockSpec((M_pad, C_pad), lambda b, t: (0, 0)),
        ],
        out_specs=pl.BlockSpec((None, tile_f, C_pad), lambda b, t: (b, t, 0)),
        compiler_params=pltpu.CompilerParams(
            dimension_semantics=("parallel", "parallel")),
    )(floor, db_pad, dct_mat)

    # slice off padding, back to PyTorch convention [B, n_mfcc, n_frames]
    out = mfcc_pad[:, :n_frames, :n_mfcc]
    return jnp.transpose(out, (0, 2, 1))


# --------------------------------------- pure-JAX reference -----------------------------------------

def _mfcc_reference(waveform, *, n_mels, num_frequencies, window_length, hop_length, n_mfcc,
                    sample_rate=16000.0, top_db=80.0):
    waveform = waveform.astype(jnp.float32)
    B, T = waveform.shape
    hop = hop_length if hop_length is not None else window_length // 2
    n_fft = 2 * (num_frequencies - 1)
    n_frames = 1 + (T - n_fft) // hop
    idx = jnp.arange(n_frames)[:, None] * hop + jnp.arange(n_fft)[None, :]
    frames = waveform[:, idx]                                                 # [B, n_frames, n_fft]
    win = jnp.concatenate([
        0.5 * (1.0 - jnp.cos(2.0 * jnp.pi * jnp.arange(window_length) / window_length)),
        jnp.zeros((n_fft - window_length,), jnp.float32)]).astype(jnp.float32)
    spec = jnp.fft.rfft(frames * win, n=n_fft, axis=-1)
    power = jnp.abs(spec) ** 2                                                # [B, n_frames, F]
    fb = melscale_fbanks(num_frequencies, 0.0, sample_rate / 2.0, n_mels, sample_rate)
    mel = jnp.einsum("bnf,fm->bnm", power, fb, precision="highest")
    db = 10.0 * jnp.log10(jnp.maximum(mel, 1e-10))
    db = jnp.maximum(db, jnp.max(db, axis=(1, 2), keepdims=True) - top_db)
    dct = create_dct(n_mfcc, n_mels, norm="ortho")
    out = jnp.einsum("bnm,mc->bnc", db, dct, precision="highest")
    return jnp.transpose(out, (0, 2, 1))                                      # [B, n_mfcc, n_frames]


if __name__ == "__main__":
    key = jax.random.PRNGKey(0)
    B, T = 2, 2048
    waveform = jax.random.normal(key, (B, T), dtype=jnp.float32)

    out = mfcc(waveform, n_mels=64, num_frequencies=129, window_length=256,
               hop_length=128, n_mfcc=32)
    out = jax.block_until_ready(out)

    n_frames = 1 + (T - 256) // 128
    assert out.shape == (B, 32, n_frames), out.shape
    assert bool(jnp.all(jnp.isfinite(out)))

    ref = _mfcc_reference(waveform, n_mels=64, num_frequencies=129, window_length=256,
                          hop_length=128, n_mfcc=32)
    max_err = float(jnp.max(jnp.abs(out - ref)))
    assert max_err < 1.0, f"max abs error vs reference = {max_err}"

    print("KERNEL_OK")
</pallas_src>

<mosaic_0001>
module attributes {stable_mosaic.version = 11 : i64} {
  func.func @_melspec_db_kernel(%arg0: i32, %arg1: i32, %arg2: memref<1x16x256xf32, #tpu.memory_space<vmem>>, %arg3: memref<256x512xf32, #tpu.memory_space<vmem>>, %arg4: memref<256x128xf32, #tpu.memory_space<vmem>>, %arg5: memref<1x16x128xf32, #tpu.memory_space<vmem>>, %arg6: memref<1x8x128xf32, #tpu.memory_space<vmem>>) attributes {dimension_semantics = [#tpu.dimension_semantics<parallel>, #tpu.dimension_semantics<arbitrary>], iteration_bounds = array<i64: 2, 1>, scalar_prefetch = 0 : i64, scratch_operands = 0 : i64, tpu.core_type = #tpu.core_type<tc>, window_params = [{transform_indices = @transform_0, window_bounds = array<i64: 1, 16, 256>}, {pipeline_mode = #tpu.pipeline_mode<synchronous>, transform_indices = @transform_1, window_bounds = array<i64: 256, 512>}, {pipeline_mode = #tpu.pipeline_mode<synchronous>, transform_indices = @transform_2, window_bounds = array<i64: 256, 128>}, {transform_indices = @transform_3, window_bounds = array<i64: 1, 16, 128>}, {transform_indices = @transform_4, window_bounds = array<i64: 1, 8, 128>}]} {
    %c0_i32 = arith.constant 0 : i32
    %0 = arith.cmpi eq, %arg1, %c0_i32 : i32
    %1 = arith.extui %0 : i1 to i32
    %c0_i32_0 = arith.constant 0 : i32
    %2 = arith.cmpi ne, %1, %c0_i32_0 : i32
    scf.if %2 {
      %cst_21 = arith.constant 0xFF800000 : f32
      %35 = vector.broadcast %cst_21 : f32 to vector<8x128xf32>
      %c0_22 = arith.constant 0 : index
      %c0_23 = arith.constant 0 : index
      %c0_24 = arith.constant 0 : index
      %36 = vector.load %arg6[%c0_22, %c0_23, %c0_24] : memref<1x8x128xf32, #tpu.memory_space<vmem>>, vector<1x8x128xf32>
      %37 = vector.shape_cast %36 : vector<1x8x128xf32> to vector<8x128xf32>
      %38 = vector.shape_cast %35 : vector<8x128xf32> to vector<1x8x128xf32>
      tpu.vector_store %arg6[%c0_22, %c0_23, %c0_24], %38 {strides = array<i32>} : memref<1x8x128xf32, #tpu.memory_space<vmem>>, vector<1x8x128xf32>,
    } else {
    }
    %c0 = arith.constant 0 : index
    %c0_1 = arith.constant 0 : index
    %c0_2 = arith.constant 0 : index
    %3 = vector.load %arg2[%c0, %c0_1, %c0_2] : memref<1x16x256xf32, #tpu.memory_space<vmem>>, vector<1x16x256xf32>
    %4 = vector.shape_cast %3 : vector<1x16x256xf32> to vector<16x256xf32>
    %c0_3 = arith.constant 0 : index
    %c0_4 = arith.constant 0 : index
    %5 = vector.load %arg3[%c0_3, %c0_4] : memref<256x512xf32, #tpu.memory_space<vmem>>, vector<256x512xf32>
    %cst = arith.constant dense<0.000000e+00> : vector<16x512xf32>
    %6 = tpu.matmul %4, %5, %cst {dimension_numbers = #tpu.dot_dimension_numbers<[1], [0], [0], [1], [0, 0, 1, 1], [], []>} : vector<16x256xf32>, vector<256x512xf32>, vector<16x512xf32> -> vector<16x512xf32>
    %7 = vector.extract_strided_slice %6 {offsets = [0, 0], sizes = [16, 256], strides = [1, 1]} : vector<16x512xf32> to vector<16x256xf32>
    %8 = vector.extract_strided_slice %6 {offsets = [0, 256], sizes = [16, 256], strides = [1, 1]} : vector<16x512xf32> to vector<16x256xf32>
    %9 = arith.mulf %7, %7 : vector<16x256xf32>
    %10 = arith.mulf %8, %8 : vector<16x256xf32>
    %11 = arith.addf %9, %10 : vector<16x256xf32>
    %c0_5 = arith.constant 0 : index
    %c0_6 = arith.constant 0 : index
    %12 = vector.load %arg4[%c0_5, %c0_6] : memref<256x128xf32, #tpu.memory_space<vmem>>, vector<256x128xf32>
    %cst_7 = arith.constant dense<0.000000e+00> : vector<16x128xf32>
    %13 = tpu.matmul %11, %12, %cst_7 {dimension_numbers = #tpu.dot_dimension_numbers<[1], [0], [0], [1], [0, 0, 1, 1], [], []>} : vector<16x256xf32>, vector<256x128xf32>, vector<16x128xf32> -> vector<16x128xf32>
    %cst_8 = arith.constant 1.000000e+01 : f32
    %14 = math.log %cst_8 : f32
    %cst_9 = arith.constant 1.000000e+01 : f32
    %15 = arith.divf %cst_9, %14 : f32
    %cst_10 = arith.constant 1.000000e-10 : f32
    %16 = vector.broadcast %cst_10 : f32 to vector<16x128xf32>
    %17 = arith.maximumf %13, %16 : vector<16x128xf32>
    %18 = math.log %17 : vector<16x128xf32>
    %19 = vector.broadcast %15 : f32 to vector<16x128xf32>
    %20 = arith.mulf %19, %18 : vector<16x128xf32>
    %c0_11 = arith.constant 0 : index
    %c0_12 = arith.constant 0 : index
    %c0_13 = arith.constant 0 : index
    %21 = vector.load %arg5[%c0_11, %c0_12, %c0_13] : memref<1x16x128xf32, #tpu.memory_space<vmem>>, vector<1x16x128xf32>
    %22 = vector.shape_cast %21 : vector<1x16x128xf32> to vector<16x128xf32>
    %23 = vector.shape_cast %20 : vector<16x128xf32> to vector<1x16x128xf32>
    tpu.vector_store %arg5[%c0_11, %c0_12, %c0_13], %23 {strides = array<i32>} : memref<1x16x128xf32, #tpu.memory_space<vmem>>, vector<1x16x128xf32>,
    %c0_14 = arith.constant 0 : index
    %c0_15 = arith.constant 0 : index
    %c0_16 = arith.constant 0 : index
    %24 = vector.load %arg6[%c0_14, %c0_15, %c0_16] : memref<1x8x128xf32, #tpu.memory_space<vmem>>, vector<1x8x128xf32>
    %25 = vector.shape_cast %24 : vector<1x8x128xf32> to vector<8x128xf32>
    %26 = vector.shape_cast %20 : vector<16x128xf32> to vector<1x16x128xf32>
    %cst_17 = arith.constant dense<0xFF800000> : vector<1xf32>
    %27 = vector.multi_reduction <maximumf>, %26, %cst_17 [1, 2] : vector<1x16x128xf32> to vector<1xf32>
    %28 = vector.shape_cast %27 : vector<1xf32> to vector<1x1x1xf32>
    %29 = vector.extract %28[0, 0, 0] : f32 from vector<1x1x1xf32>
    %30 = vector.broadcast %29 : f32 to vector<8x128xf32>
    %31 = arith.maximumf %25, %30 : vector<8x128xf32>
    %c0_18 = arith.constant 0 : index
    %c0_19 = arith.constant 0 : index
    %c0_20 = arith.constant 0 : index
    %32 = vector.load %arg6[%c0_18, %c0_19, %c0_20] : memref<1x8x128xf32, #tpu.memory_space<vmem>>, vector<1x8x128xf32>
    %33 = vector.shape_cast %32 : vector<1x8x128xf32> to vector<8x128xf32>
    %34 = vector.shape_cast %31 : vector<8x128xf32> to vector<1x8x128xf32>
    tpu.vector_store %arg6[%c0_18, %c0_19, %c0_20], %34 {strides = array<i32>} : memref<1x8x128xf32, #tpu.memory_space<vmem>>, vector<1x8x128xf32>,
    return
  }
  func.func @transform_0(%arg0: i32, %arg1: i32) -> (i32, i32, i32) {
    %c0_i32 = arith.constant 0 : i32
    %c0_i32_0 = arith.constant 0 : i32
    return %arg0, %arg1, %c0_i32 : i32, i32, i32
  }
  func.func @transform_1(%arg0: i32, %arg1: i32) -> (i32, i32) {
    %c0_i32 = arith.constant 0 : i32
    %c0_i32_0 = arith.constant 0 : i32
    %c0_i32_1 = arith.constant 0 : i32
    return %c0_i32, %c0_i32_0 : i32, i32
  }
  func.func @transform_2(%arg0: i32, %arg1: i32) -> (i32, i32) {
    %c0_i32 = arith.constant 0 : i32
    %c0_i32_0 = arith.constant 0 : i32
    %c0_i32_1 = arith.constant 0 : i32
    return %c0_i32, %c0_i32_0 : i32, i32
  }
  func.func @transform_3(%arg0: i32, %arg1: i32) -> (i32, i32, i32) {
    %c0_i32 = arith.constant 0 : i32
    %c0_i32_0 = arith.constant 0 : i32
    return %arg0, %arg1, %c0_i32 : i32, i32, i32
  }
  func.func @transform_4(%arg0: i32, %arg1: i32) -> (i32, i32, i32) {
    %c0_i32 = arith.constant 0 : i32
    %c0_i32_0 = arith.constant 0 : i32
    %c0_i32_1 = arith.constant 0 : i32
    return %arg0, %c0_i32, %c0_i32_0 : i32, i32, i32
  }
}

</mosaic_0001>

<bundles_post_ra>
// kernel: tpu_custom_call.1
= control target key start
LH: loop header
LB: loop body
LE: loop exit
PB: predicated region body
PF: predicated region fallthrough
CT: control target
= control target key end

     0   :  { %10 = vsyncpa [#allocation3], 0  ;;  %s1761_s0 = inlined_call_operand.hbm [shape: f32[2,16,256], index: 0, kind: input, shape index: {}]   ;;  %s1762_s1 = inlined_call_operand.hbm [shape: f32[256,512], index: 1, kind: input, shape index: {}]   ;;  %s1763_s2 = inlined_call_operand.hbm [shape: f32[256,128], index: 2, kind: input, shape index: {}]   ;;  %s1764_s3 = inlined_call_operand.hbm [shape: f32[2,16,128], index: 3, kind: output, shape index: {0}]   ;;  %s1765_s4 = inlined_call_operand.hbm [shape: f32[2,8,128], index: 4, kind: output, shape index: {1}]  }
   0x1   :  { %12 = vsyncpa [#allocation3 + $0x1], 0 }
   0x2   :  { %13 = vsyncpa [#allocation6], 0 }
   0x3   :  { %14 = vsyncpa [#allocation4], 0 }
   0x4   :  { %16 = vsyncpa [#allocation4 + $0x1], 0 }
   0x5   :  { %17 = vsyncpa [#allocation10], 0 }
   0x6   :  { %19 = vsyncpa [#allocation10 + $0x1], 0  ;;  %s1468_s15 = smov 0   ;;  %s1470_s16 = smov 0  }
   0x7   :  { %s1472_s17 = smov 0   ;;  %s1474_s18 = smov 0  }
   0x8   :  { %s1476_s19 = smov 0   ;;  %s1478_s20 = smov 0  }
   0x9 LB: > { %s883_s21 = sadd.s32 4294967295, %s1428_s20   ;;  %s884_s22 = sadd.s32 4294967294, %s1428_s20   ;;  %s1428_s20 = sphi %s1478_s20, %s25_s20   ;;  %s1424_s19 = sphi %s1476_s19, %s1787_s19   ;;  %s1420_s18 = sphi %s1474_s18, %s1786_s18   ;;  %s1416_s17 = sphi %s1472_s17, %s1785_s17   ;;  %s1412_s16 = sphi %s1470_s16, %s1784_s16   ;;  %s1408_s15 = sphi %s1468_s15, %s1783_s15  }
   0xa   : > { %p59_p0 = scmp.ne.s32.totalorder %s1412_s16, %s1408_s15  ;;  %p1502_p1 = scmp.eq.s32.totalorder %s883_s21, 0 }
   0xb   : > { %p1506_p2 = scmp.eq.s32.totalorder %s883_s21, 1  ;;  %p133_p3 = scmp.eq.s32.totalorder %s884_s22, 1 }
   0xc   : > { %s1770_s23 = scalar_select %p1502_p1, 1, 0 }
   0xd   : > { %p1512_p4 = por %p1502_p1, %p59_p0  ;;  %p885_p5 = scmp.ge.s32.totalorder %s1428_s20, 1 }
   0xe   : > { %p1517_p6 = por %p133_p3, %p59_p0  ;;  %p166_p7 = scmp.lt.s32.totalorder %s1428_s20, 3 }
   0xf   : > { %s1772_s25 = scalar_select %p1512_p4, 1, 0 }
  0x10   : > { %s1773_s26 = scalar_select %p1517_p6, 1, 0 }
  0x11   : > { %p1522_p8 = pnand %p885_p5, %p166_p7  ;;  %s1430_s28 = smov [#allocation5]  }
  0x12   : > { %s178_s29 = sshll.u32 %s1430_s28, 4  ;;  %s1431_s5 = smov [#allocation7]   ;;  %s1526_s29 = int_to_ptr.vmem [resolvable:$true] %s178_s29 }
  0x13   : > { %p1137_p9 = pneg %p1522_p8  ;;  %s191_s6 = sshll.u32 %s1431_s5, 4  ;;  %s1537_s6 = int_to_ptr.vmem [resolvable:$true] %s191_s6 }
  0x14   : > { %s1224_s9 = scalar_lea.hbm %s1762_s1, 16384 }
  0x15   : > { %p1533_p11 = pnand %p1137_p9, %p1502_p1  ;;  %p1225_p12 = scmp.ne.s32.totalorder %s1762_s1, %s1224_s9 }
  0x16   : > { %p1231_p5 = scmp.lt.u32.totalorder %s1224_s9, %s1762_s1 }
  0x17   : > { %p1226_p13 = pneg %p1533_p11 }
  0x19   : > { %p1227_p0 = pnand %p1226_p13, %p1225_p12 }
  0x1b   : > { %p1228_p3 = pneg %p1227_p0 }
  0x1d   : > { %p1233_p7 = pnand %p1231_p5, %p1228_p3 }
  0x1f   : > { %1236 = shalt.err (!%p1233_p7)
}
  0x20   : > { %s1237_s14 = scalar_lea.vmem %s1526_s29, 16384  ;;  %p1245_p1 = scmp.lt.s32.totalorder %s1526_s29, %s1526_s29 }
  0x21   : > { %p1238_p9 = scmp.ne.s32.totalorder %s1526_s29, %s1237_s14  ;;  %p1246_p12 = scmp.lt.s32.totalorder %s1237_s14, %s1237_s14 }
  0x23   : > { %p1240_p10 = pnand %p1238_p9, %p1226_p13  ;;  %p1247_p0 = por %p1246_p12, %p1245_p1 }
  0x25   : > { %p1241_p6 = pneg %p1240_p10 }
  0x27   : > { %p1248_p4 = pnand %p1247_p0, %p1241_p6 }
  0x29   : > { %1251 = shalt.err (!%p1248_p4)
}
  0x2a   : > { %s1432_s21 = smov 512   ;;  %s1433_s22 = smov 32  }
  0x2b   : > { %1140 = dma.hbm_to_vmem [thread:$0]  (!%p1533_p11), %s1762_s1, 16384, %s1526_s29, [#allocation6], %s1432_s21, %s1432_s21, %s1433_s22  }
  0x2c   : > { %s1252_s9 = scalar_lea.hbm %s1763_s2, 4096 }
  0x2d   : > { %p1253_p1 = scmp.ne.s32.totalorder %s1763_s2, %s1252_s9  ;;  %p1259_p10 = scmp.lt.u32.totalorder %s1252_s9, %s1763_s2 }
  0x2f   : > { %p1255_p4 = pnand %p1253_p1, %p1226_p13 }
  0x31   : > { %p1256_p6 = pneg %p1255_p4 }
  0x33   : > { %p1261_p3 = pnand %p1259_p10, %p1256_p6 }
  0x35   : > { %1264 = shalt.err (!%p1261_p3)
}
  0x36   : > { %s1265_s29 = scalar_lea.vmem %s1537_s6, 4096  ;;  %p1273_p12 = scmp.lt.s32.totalorder %s1537_s6, %s1537_s6 }
  0x37   : > { %p1266_p5 = scmp.ne.s32.totalorder %s1537_s6, %s1265_s29  ;;  %p1274_p0 = scmp.lt.s32.totalorder %s1265_s29, %s1265_s29 }
  0x39   : > { %p1268_p7 = pnand %p1266_p5, %p1226_p13  ;;  %p1275_p1 = por %p1274_p0, %p1273_p12 }
  0x3b   : > { %p1269_p9 = pneg %p1268_p7 }
  0x3d   : > { %p1276_p4 = pnand %p1275_p1, %p1269_p9 }
  0x3f   : > { %1279 = shalt.err (!%p1276_p4)
}
  0x40   : > { %s1434_s14 = smov 128   ;;  %s1435_s21 = smov 8  }
  0x41   : > { %1143 = dma.hbm_to_vmem [thread:$0]  (!%p1533_p11), %s1763_s2, 4096, %s1537_s6, [#allocation6], %s1434_s14, %s1434_s14, %s1435_s21  }
  0x42   : > { %s37_s5 = sadd.s32 1, %s1424_s19  ;;  %s46_s7 = sadd.s32 1, %s1416_s17 }
  0x43   : > { %p39_p13 = scmp.ge.s32.totalorder %s37_s5, 2  ;;  %p53_p6 = scmp.ne.s32.totalorder %s1416_s17, %s1412_s16 }
  0x44   : > { %p54_p10 = scmp.eq.s32.totalorder %s1428_s20, 0  ;;  %p1157_p3 = scmp.lt.s32.totalorder %s1428_s20, 2 }
  0x45   : > { %s1789_s5 = smov (%p39_p13, %s37_s5), 0  ;;  %p1601_p7 = por %p1506_p2, %p53_p6 }
  0x46   : > { %p55_p5 = por %p54_p10, %p53_p6  ;;  %s41_s30 = ssub.s32 %s1424_s19, %s1789_s5 }
  0x47   : > { %s1776_s8 = scalar_select %p1601_p7, 1, 0 }
  0x48   : > { %s205_s9 = sand.u32 1, %s1416_s17   ;;  %p44_p9 = scmp.eq.s32.totalorder %s41_s30, 0 }
  0x49   : > { %s889_s6 = sshll.u32 %s205_s9, 5  ;;  %s905_s10 = sshll.u32 %s1424_s19, 9 }
  0x4a   : > { %s1610_s11 = scalar_select %p44_p9, %s1416_s17, %s46_s7  }
  0x4b   : > { %s1615_s29 = scalar_lea.hbm %s1761_s0, %s905_s10  ;;  %s209_s24 = scalar_lea.vmem [#allocation2], %s889_s6 }
  0x4c   : > { %s219_s14 = sshll.u32 %s209_s24, 4  ;;  %p1619_p2 = pnand %p1157_p3, %p55_p5  ;;  %s1623_s14 = int_to_ptr.vmem [resolvable:$true] %s219_s14 }
  0x4d   : > { %s1625_s22 = scalar_lea.sflag [#allocation3], %s205_s9  ;;  %s1280_s28 = scalar_lea.hbm %s1615_s29, 512 }
  0x4e   : > { %p1281_p11 = scmp.ne.s32.totalorder %s1615_s29, %s1280_s28  ;;  %p1282_p12 = pneg %p1619_p2 }
  0x4f   : > { %s1285_s6 = scalar_lea.hbm %s1761_s0, 1024  ;;  %p1286_p4 = scmp.lt.u32.totalorder %s1615_s29, %s1761_s0 }
  0x50   : > { %p1283_p0 = pnand %p1282_p12, %p1281_p11  ;;  %p1287_p13 = scmp.lt.u32.totalorder %s1285_s6, %s1280_s28 }
  0x51   : > { %p1289_p10 = scmp.lt.u32.totalorder %s1280_s28, %s1615_s29 }
  0x52   : > { %p1284_p1 = pneg %p1283_p0  ;;  %p1288_p6 = por %p1287_p13, %p1286_p4 }
  0x54   : > { %p1290_p3 = por %p1289_p10, %p1288_p6 }
  0x56   : > { %p1291_p5 = pnand %p1290_p3, %p1284_p1 }
  0x58   : > { %1294 = shalt.err (!%p1291_p5)
}
  0x59   : > { %s1295_s9 = scalar_lea.vmem %s1623_s14, 512  ;;  %s1436_s13 = smov [#allocation2]  }
  0x5a   : > { %p1296_p9 = scmp.ne.s32.totalorder %s1623_s14, %s1295_s9  ;;  %s1300_s24 = sshll.u32 %s1436_s13, 4  ;;  %s1301_s24 = int_to_ptr.vmem [resolvable:$false] %s1300_s24 }
  0x5b   : > { %s1302_s7 = scalar_lea.vmem %s1301_s24, 1024  ;;  %p1303_p7 = scmp.lt.s32.totalorder %s1623_s14, %s1301_s24 }
  0x5c   : > { %p1298_p11 = pnand %p1296_p9, %p1282_p12  ;;  %p1304_p4 = scmp.lt.s32.totalorder %s1302_s7, %s1295_s9 }
  0x5e   : > { %p1299_p0 = pneg %p1298_p11  ;;  %p1305_p13 = por %p1304_p4, %p1303_p7 }
  0x60   : > { %p1306_p6 = pnand %p1305_p13, %p1299_p0 }
  0x62   : > { %1309 = shalt.err (!%p1306_p6)
}
  0x63   : > { %s1437_s28 = smov 256   ;;  %s1438_s30 = smov 16  }
  0x64   : > { %1147 = dma.hbm_to_vmem [thread:$0]  (!%p1619_p2), %s1615_s29, 512, %s1623_s14, %s1625_s22, %s1437_s28, %s1437_s28, %s1438_s30  }
  0x65   : > { %231 = sbr.rel (%p1522_p8) target bundleno = 856 (0x358), region = 32  ;;  %s1656_s6 = sand.u32 (!%p1522_p8), 1, %s1412_s16  }
  0x66   : > { %s893_s10 = sshll.u32 (!%p1522_p8), %s1656_s6, 5  ;;  %s234_s12 = scalar_lea.sflag (!%p1522_p8), [#allocation3], %s1656_s6 }
  0x67   : > { %s1660_s9 = scalar_lea.vmem (!%p1522_p8), [#allocation2], %s893_s10  ;;  %p1778_p7 = scmp.ne.s32.totalorder (!%p1522_p8), %s1772_s25, 0 }
  0x6c   : > { %1391 = dma.done.wait (%p1778_p7), %s234_s12, 512  }
  0x6d   : > { %1393 = vsyncadd (%p1778_p7), %s234_s12, 4294966784  ;;  %p1779_p2 = scmp.ne.s32.totalorder %s1770_s23, 0 }
  0x6f   : > { %1395 = dma.done.wait (%p1779_p2), [#allocation6], 20480  }
  0x70   : > { %1397 = vsyncadd (%p1779_p2), [#allocation6], 4294946816  ;;  %v287_v0 = vld [vmem:[#allocation5 + $0x8] sm:$0xff]  ;;  %v289_v2 = vld [vmem:[#allocation5 + $0x18] sm:$0xff]  ;;  %s896_s23 = sshll.u32 %s1656_s6, 4  ;;  %s906_s29 = sshll.u32 %s1420_s18, 8 }
  0x71   : > { %v291_v1 = vld [vmem:[#allocation5 + $0x28] sm:$0xff]  ;;  %v293_v4 = vld [vmem:[#allocation5 + $0x38] sm:$0xff]  ;;  %v286_v5 = vld [vmem:[#allocation5] sm:$0xff]  ;;  %s267_s25 = scalar_lea.vmem [#allocation8], %s896_s23  ;;  %s1681_s22 = scalar_lea.hbm %s1764_s3, %s906_s29 }
  0x72   : > { %v945_v3 = vpack.c.bf16 %v291_v1, %v287_v0  ;;  %v290_v6 = vld [vmem:[#allocation5 + $0x20] sm:$0xff]  ;;  %v1009_v7 = vpack.c.bf16 %v293_v4, %v289_v2  ;;  %v288_v9 = vld [vmem:[#allocation5 + $0x10] sm:$0xff]  ;;  %v295_v11 = vld [vmem:[#allocation5 + $0x48] sm:$0xff]  ;;  %s732_s27 = sshll.u32 %s267_s25, 4  ;;  %s712_s13 = scalar_lea.sflag [#allocation4], %s1656_s6  ;;  %s1675_s27 = int_to_ptr.vmem [resolvable:$true] %s732_s27 }
  0x73   : > { %v947_v8 = vpack.c.bf16 %v290_v6, %v286_v5  ;;  %v292_v10 = vld [vmem:[#allocation5 + $0x30] sm:$0xff]  ;;  %v299_v13 = vld [vmem:[#allocation5 + $0x68] sm:$0xff]  ;;  %v297_v14 = vld [vmem:[#allocation5 + $0x58] sm:$0xff]  ;;  %s1310_s24 = scalar_lea.vmem %s1675_s27, 256  ;;  %p1780_p12 = scmp.ne.s32.totalorder %s1776_s8, 0 }
  0x74   : > { %946 = vmatprep.subr.bf16.mxu0 %v945_v3  ;;  %v1011_v12 = vpack.c.bf16 %v292_v10, %v288_v9  ;;  %v301_v15 = vld [vmem:[#allocation5 + $0x78] sm:$0xff]  ;;  %1010 = vmatprep.subr.bf16.mxu1 %v1009_v7  ;;  %v949_v16 = vpack.c.bf16 %v299_v13, %v295_v11  ;;  %v294_v18 = vld [vmem:[#allocation5 + $0x40] sm:$0xff]  ;;  %v296_v20 = vld [vmem:[#allocation5 + $0x50] sm:$0xff]  ;;  %p1311_p8 = scmp.ne.s32.totalorder %s1675_s27, %s1310_s24  ;;  %s1439_s7 = smov [#allocation8]  }
  0x75   : > { %948 = vmatpush1.bf16.msra.mxu0 %v947_v8  ;;  %v1013_v17 = vpack.c.bf16 %v301_v15, %v297_v14  ;;  %v298_v19 = vld [vmem:[#allocation5 + $0x60] sm:$0xff]  ;;  %v300_v22 = vld [vmem:[#allocation5 + $0x70] sm:$0xff]  ;;  %v303_v23 = vld [vmem:[#allocation5 + $0x88] sm:$0xff]  ;;  %s1314_s28 = sshll.u32 %s1439_s7, 4  ;;  %s1315_s28 = int_to_ptr.vmem [resolvable:$false] %s1314_s28 }
  0x76   : > { %1012 = vmatpush1.bf16.msra.mxu1 %v1011_v12  ;;  %v951_v21 = vpack.c.bf16 %v298_v19, %v294_v18  ;;  %v307_v24 = vld [vmem:[#allocation5 + $0xa8] sm:$0xff]  ;;  %950 = vmatprep.subr.bf16.mxu0 %v949_v16  ;;  %v1015_v25 = vpack.c.bf16 %v300_v22, %v296_v20  ;;  %v305_v27 = vld [vmem:[#allocation5 + $0x98] sm:$0xff]  ;;  %v302_v29 = vld [vmem:[#allocation5 + $0x80] sm:$0xff]  ;;  %p1312_p1 = pnand %p1311_p8, %p1780_p12  ;;  %s1316_s30 = scalar_lea.vmem %s1315_s28, 512 }
  0x77   : > { %1014 = vmatprep.subr.bf16.mxu1 %v1013_v17  ;;  %v953_v26 = vpack.c.bf16 %v307_v24, %v303_v23  ;;  %v309_v28 = vld [vmem:[#allocation5 + $0xb8] sm:$0xff]  ;;  %v306_v31 = vld [vmem:[#allocation5 + $0xa0] sm:$0xff]  ;;  %v304_v32 = vld [vmem:[#allocation5 + $0x90] sm:$0xff]  ;;  %p1317_p3 = scmp.lt.s32.totalorder %s1675_s27, %s1315_s28  ;;  %p1318_p5 = scmp.lt.s32.totalorder %s1316_s30, %s1310_s24 }
  0x78   : > { %v1017_v30 = vpack.c.bf16 %v309_v28, %v305_v27  ;;  %v308_v33 = vld [vmem:[#allocation5 + $0xb0] sm:$0xff]  ;;  %v955_v34 = vpack.c.bf16 %v306_v31, %v302_v29  ;;  %v311_v35 = vld [vmem:[#allocation5 + $0xc8] sm:$0xff]  ;;  %v313_v37 = vld [vmem:[#allocation5 + $0xd8] sm:$0xff]  ;;  %p1313_p10 = pneg %p1312_p1 }
  0x79   : > { %952 = vmatpush1.bf16.msra.mxu0 %v951_v21  ;;  %v315_v36 = vld [vmem:[#allocation5 + $0xe8] sm:$0xff]  ;;  %v1019_v38 = vpack.c.bf16 %v308_v33, %v304_v32  ;;  %v317_v40 = vld [vmem:[#allocation5 + $0xf8] sm:$0xff]  ;;  %v310_v41 = vld [vmem:[#allocation5 + $0xc0] sm:$0xff]  ;;  %p1319_p9 = por %p1318_p5, %p1317_p3 }
  0x7a   : > { %1016 = vmatpush1.bf16.msra.mxu1 %v1015_v25  ;;  %954 = vmatprep.subr.bf16.mxu0 %v953_v26  ;;  %v957_v39 = vpack.c.bf16 %v315_v36, %v311_v35  ;;  %v314_v42 = vld [vmem:[#allocation5 + $0xe0] sm:$0xff]  ;;  %v1021_v43 = vpack.c.bf16 %v317_v40, %v313_v37  ;;  %v312_v44 = vld [vmem:[#allocation5 + $0xd0] sm:$0xff]  ;;  %v319_v46 = vld [vmem:[#allocation5 + $0x108] sm:$0xff] }
  0x7b   : > { %1018 = vmatprep.subr.bf16.mxu1 %v1017_v30  ;;  %v316_v45 = vld [vmem:[#allocation5 + $0xf0] sm:$0xff]  ;;  %v323_v47 = vld [vmem:[#allocation5 + $0x128] sm:$0xff]  ;;  %v321_v48 = vld [vmem:[#allocation5 + $0x118] sm:$0xff]  ;;  %v959_v50 = vpack.c.bf16 %v314_v42, %v310_v41  ;;  %p1320_p11 = pnand %p1319_p9, %p1313_p10 }
  0x7c   : > { %v325_v49 = vld [vmem:[#allocation5 + $0x138] sm:$0xff]  ;;  %v1023_v51 = vpack.c.bf16 %v316_v45, %v312_v44  ;;  %v961_v52 = vpack.c.bf16 %v323_v47, %v319_v46  ;;  %v318_v53 = vld [vmem:[#allocation5 + $0x100] sm:$0xff]  ;;  %v320_v55 = vld [vmem:[#allocation5 + $0x110] sm:$0xff] }
  0x7d   : > { %956 = vmatpush1.bf16.msra.mxu0 %v955_v34  ;;  %v322_v54 = vld [vmem:[#allocation5 + $0x120] sm:$0xff]  ;;  %v1025_v56 = vpack.c.bf16 %v325_v49, %v321_v48  ;;  %v324_v57 = vld [vmem:[#allocation5 + $0x130] sm:$0xff]  ;;  %v327_v58 = vld [vmem:[#allocation5 + $0x148] sm:$0xff] }
  0x7e   : > { %1020 = vmatpush1.bf16.msra.mxu1 %v1019_v38  ;;  %958 = vmatprep.subr.bf16.mxu0 %v957_v39  ;;  %v331_v59 = vld [vmem:[#allocation5 + $0x168] sm:$0xff]  ;;  %v329_v60 = vld [vmem:[#allocation5 + $0x158] sm:$0xff]  ;;  %v963_v62 = vpack.c.bf16 %v322_v54, %v318_v53  ;;  %v1027_v63 = vpack.c.bf16 %v324_v57, %v320_v55  ;;  %v326_v1 = vld [vmem:[#allocation5 + $0x140] sm:$0xff] }
  0x7f   : > { %1022 = vmatprep.subr.bf16.mxu1 %v1021_v43  ;;  %v333_v61 = vld [vmem:[#allocation5 + $0x178] sm:$0xff]  ;;  %v965_v0 = vpack.c.bf16 %v331_v59, %v327_v58  ;;  %v330_v2 = vld [vmem:[#allocation5 + $0x160] sm:$0xff]  ;;  %v328_v3 = vld [vmem:[#allocation5 + $0x150] sm:$0xff] }
  0x80   : > { %v1029_v4 = vpack.c.bf16 %v333_v61, %v329_v60  ;;  %v332_v5 = vld [vmem:[#allocation5 + $0x170] sm:$0xff]  ;;  %v335_v6 = vld [vmem:[#allocation5 + $0x188] sm:$0xff]  ;;  %v337_v8 = vld [vmem:[#allocation5 + $0x198] sm:$0xff]  ;;  %v967_v10 = vpack.c.bf16 %v330_v2, %v326_v1 }
  0x81   : > { %960 = vmatpush1.bf16.msra.mxu0 %v959_v50  ;;  %v339_v7 = vld [vmem:[#allocation5 + $0x1a8] sm:$0xff]  ;;  %v341_v9 = vld [vmem:[#allocation5 + $0x1b8] sm:$0xff]  ;;  %v1031_v11 = vpack.c.bf16 %v332_v5, %v328_v3  ;;  %v334_v13 = vld [vmem:[#allocation5 + $0x180] sm:$0xff] }
  0x82   : > { %1024 = vmatpush1.bf16.msra.mxu1 %v1023_v51  ;;  %962 = vmatprep.subr.bf16.mxu0 %v961_v52  ;;  %v969_v12 = vpack.c.bf16 %v339_v7, %v335_v6  ;;  %v338_v14 = vld [vmem:[#allocation5 + $0x1a0] sm:$0xff]  ;;  %v336_v15 = vld [vmem:[#allocation5 + $0x190] sm:$0xff]  ;;  %v1033_v16 = vpack.c.bf16 %v341_v9, %v337_v8  ;;  %v343_v18 = vld [vmem:[#allocation5 + $0x1c8] sm:$0xff] }
  0x83   : > { %1026 = vmatprep.subr.bf16.mxu1 %v1025_v56  ;;  %v340_v17 = vld [vmem:[#allocation5 + $0x1b0] sm:$0xff]  ;;  %v347_v19 = vld [vmem:[#allocation5 + $0x1e8] sm:$0xff]  ;;  %v345_v20 = vld [vmem:[#allocation5 + $0x1d8] sm:$0xff]  ;;  %v971_v22 = vpack.c.bf16 %v338_v14, %v334_v13 }
  0x84   : > { %v349_v21 = vld [vmem:[#allocation5 + $0x1f8] sm:$0xff]  ;;  %v1035_v23 = vpack.c.bf16 %v340_v17, %v336_v15  ;;  %v973_v24 = vpack.c.bf16 %v347_v19, %v343_v18  ;;  %v342_v25 = vld [vmem:[#allocation5 + $0x1c0] sm:$0xff]  ;;  %v344_v27 = vld [vmem:[#allocation5 + $0x1d0] sm:$0xff] }
  0x85   : > { %964 = vmatpush1.bf16.msra.mxu0 %v963_v62  ;;  %v346_v26 = vld [vmem:[#allocation5 + $0x1e0] sm:$0xff]  ;;  %v1037_v28 = vpack.c.bf16 %v349_v21, %v345_v20  ;;  %v348_v29 = vld [vmem:[#allocation5 + $0x1f0] sm:$0xff]  ;;  %v351_v30 = vld [vmem:[#allocation5 + $0x208] sm:$0xff] }
  0x86   : > { %1028 = vmatpush1.bf16.msra.mxu1 %v1027_v63  ;;  %966 = vmatprep.subr.bf16.mxu0 %v965_v0  ;;  %v355_v31 = vld [vmem:[#allocation5 + $0x228] sm:$0xff]  ;;  %v353_v32 = vld [vmem:[#allocation5 + $0x218] sm:$0xff]  ;;  %v975_v34 = vpack.c.bf16 %v346_v26, %v342_v25  ;;  %v1039_v35 = vpack.c.bf16 %v348_v29, %v344_v27  ;;  %v350_v37 = vld [vmem:[#allocation5 + $0x200] sm:$0xff] }
  0x87   : > { %1030 = vmatprep.subr.bf16.mxu1 %v1029_v4  ;;  %v357_v33 = vld [vmem:[#allocation5 + $0x238] sm:$0xff]  ;;  %v977_v36 = vpack.c.bf16 %v355_v31, %v351_v30  ;;  %v354_v38 = vld [vmem:[#allocation5 + $0x220] sm:$0xff]  ;;  %v352_v39 = vld [vmem:[#allocation5 + $0x210] sm:$0xff] }
  0x88   : > { %v1041_v40 = vpack.c.bf16 %v357_v33, %v353_v32  ;;  %v356_v41 = vld [vmem:[#allocation5 + $0x230] sm:$0xff]  ;;  %v359_v42 = vld [vmem:[#allocation5 + $0x248] sm:$0xff]  ;;  %v361_v44 = vld [vmem:[#allocation5 + $0x258] sm:$0xff]  ;;  %v979_v46 = vpack.c.bf16 %v354_v38, %v350_v37 }
  0x89   : > { %968 = vmatpush1.bf16.msra.mxu0 %v967_v10  ;;  %v363_v43 = vld [vmem:[#allocation5 + $0x268] sm:$0xff]  ;;  %v365_v45 = vld [vmem:[#allocation5 + $0x278] sm:$0xff]  ;;  %v1043_v47 = vpack.c.bf16 %v356_v41, %v352_v39  ;;  %v358_v49 = vld [vmem:[#allocation5 + $0x240] sm:$0xff] }
  0x8a   : > { %1032 = vmatpush1.bf16.msra.mxu1 %v1031_v11  ;;  %970 = vmatprep.subr.bf16.mxu0 %v969_v12  ;;  %v981_v48 = vpack.c.bf16 %v363_v43, %v359_v42  ;;  %v362_v50 = vld [vmem:[#allocation5 + $0x260] sm:$0xff]  ;;  %v360_v51 = vld [vmem:[#allocation5 + $0x250] sm:$0xff]  ;;  %v1045_v52 = vpack.c.bf16 %v365_v45, %v361_v44  ;;  %v367_v54 = vld [vmem:[#allocation5 + $0x288] sm:$0xff] }
  0x8b   : > { %1034 = vmatprep.subr.bf16.mxu1 %v1033_v16  ;;  %v364_v53 = vld [vmem:[#allocation5 + $0x270] sm:$0xff]  ;;  %v371_v55 = vld [vmem:[#allocation5 + $0x2a8] sm:$0xff]  ;;  %v369_v56 = vld [vmem:[#allocation5 + $0x298] sm:$0xff]  ;;  %v983_v58 = vpack.c.bf16 %v362_v50, %v358_v49 }
  0x8c   : > { %v373_v57 = vld [vmem:[#allocation5 + $0x2b8] sm:$0xff]  ;;  %v1047_v59 = vpack.c.bf16 %v364_v53, %v360_v51  ;;  %v985_v60 = vpack.c.bf16 %v371_v55, %v367_v54  ;;  %v366_v61 = vld [vmem:[#allocation5 + $0x280] sm:$0xff]  ;;  %v368_v63 = vld [vmem:[#allocation5 + $0x290] sm:$0xff] }
  0x8d   : > { %972 = vmatpush1.bf16.msra.mxu0 %v971_v22  ;;  %v370_v62 = vld [vmem:[#allocation5 + $0x2a0] sm:$0xff]  ;;  %v1049_v0 = vpack.c.bf16 %v373_v57, %v369_v56  ;;  %v372_v1 = vld [vmem:[#allocation5 + $0x2b0] sm:$0xff]  ;;  %v375_v2 = vld [vmem:[#allocation5 + $0x2c8] sm:$0xff] }
  0x8e   : > { %1036 = vmatpush1.bf16.msra.mxu1 %v1035_v23  ;;  %974 = vmatprep.subr.bf16.mxu0 %v973_v24  ;;  %v379_v3 = vld [vmem:[#allocation5 + $0x2e8] sm:$0xff]  ;;  %v377_v4 = vld [vmem:[#allocation5 + $0x2d8] sm:$0xff]  ;;  %v987_v6 = vpack.c.bf16 %v370_v62, %v366_v61  ;;  %v374_v7 = vld [vmem:[#allocation5 + $0x2c0] sm:$0xff]  ;;  %v1051_v8 = vpack.c.bf16 %v372_v1, %v368_v63 }
  0x8f   : > { %1038 = vmatprep.subr.bf16.mxu1 %v1037_v28  ;;  %v381_v5 = vld [vmem:[#allocation5 + $0x2f8] sm:$0xff]  ;;  %v989_v9 = vpack.c.bf16 %v379_v3, %v375_v2  ;;  %v378_v10 = vld [vmem:[#allocation5 + $0x2e0] sm:$0xff]  ;;  %v376_v11 = vld [vmem:[#allocation5 + $0x2d0] sm:$0xff] }
  0x90   : > { %v380_v12 = vld [vmem:[#allocation5 + $0x2f0] sm:$0xff]  ;;  %v1053_v13 = vpack.c.bf16 %v381_v5, %v377_v4  ;;  %v383_v14 = vld [vmem:[#allocation5 + $0x308] sm:$0xff]  ;;  %v385_v17 = vld [vmem:[#allocation5 + $0x318] sm:$0xff]  ;;  %v991_v19 = vpack.c.bf16 %v378_v10, %v374_v7 }
  0x91   : > { %976 = vmatpush1.bf16.msra.mxu0 %v975_v34  ;;  %v387_v15 = vld [vmem:[#allocation5 + $0x328] sm:$0xff]  ;;  %v389_v18 = vld [vmem:[#allocation5 + $0x338] sm:$0xff]  ;;  %v1055_v20 = vpack.c.bf16 %v380_v12, %v376_v11  ;;  %v382_v22 = vld [vmem:[#allocation5 + $0x300] sm:$0xff] }
  0x92   : > { %1040 = vmatpush1.bf16.msra.mxu1 %v1039_v35  ;;  %978 = vmatprep.subr.bf16.mxu0 %v977_v36  ;;  %v283_v16 = vld [vmem:[%s1660_s9 + $0x8] sm:$0xff]  ;;  %v993_v21 = vpack.c.bf16 %v387_v15, %v383_v14  ;;  %v386_v23 = vld [vmem:[#allocation5 + $0x320] sm:$0xff]  ;;  %v384_v24 = vld [vmem:[#allocation5 + $0x310] sm:$0xff]  ;;  %v1057_v25 = vpack.c.bf16 %v389_v18, %v385_v17 }
  0x93   : > { %1042 = vmatprep.subr.bf16.mxu1 %v1041_v40  ;;  %478 = vmatprep.mubr.f32.mxu0 %v283_v16  ;;  %v388_v26 = vld [vmem:[#allocation5 + $0x330] sm:$0xff]  ;;  %v391_v27 = vld [vmem:[#allocation5 + $0x348] sm:$0xff]  ;;  %v393_v29 = vld [vmem:[#allocation5 + $0x358] sm:$0xff]  ;;  %v995_v31 = vpack.c.bf16 %v386_v23, %v382_v22 }
  0x94   : > { %555 = vmatprep.mubr.f32.mxu1 %v283_v16  ;;  %v395_v28 = vld [vmem:[#allocation5 + $0x368] sm:$0xff]  ;;  %v397_v30 = vld [vmem:[#allocation5 + $0x378] sm:$0xff]  ;;  %v1059_v32 = vpack.c.bf16 %v388_v26, %v384_v24  ;;  %v390_v34 = vld [vmem:[#allocation5 + $0x340] sm:$0xff] }
  0x95   : > { %980 = vmatpush1.bf16.msra.mxu0 %v979_v46  ;;  %v997_v33 = vpack.c.bf16 %v395_v28, %v391_v27  ;;  %v394_v35 = vld [vmem:[#allocation5 + $0x360] sm:$0xff]  ;;  %v392_v36 = vld [vmem:[#allocation5 + $0x350] sm:$0xff]  ;;  %v1061_v37 = vpack.c.bf16 %v397_v30, %v393_v29  ;;  %v399_v39 = vld [vmem:[#allocation5 + $0x388] sm:$0xff] }
  0x96   : > { %1044 = vmatpush1.bf16.msra.mxu1 %v1043_v47  ;;  %982 = vmatprep.subr.bf16.mxu0 %v981_v48  ;;  %v396_v38 = vld [vmem:[#allocation5 + $0x370] sm:$0xff]  ;;  %v403_v40 = vld [vmem:[#allocation5 + $0x3a8] sm:$0xff]  ;;  %v401_v41 = vld [vmem:[#allocation5 + $0x398] sm:$0xff]  ;;  %v999_v43 = vpack.c.bf16 %v394_v35, %v390_v34 }
  0x97   : > { %1046 = vmatprep.subr.bf16.mxu1 %v1045_v52  ;;  %v405_v42 = vld [vmem:[#allocation5 + $0x3b8] sm:$0xff]  ;;  %v1063_v44 = vpack.c.bf16 %v396_v38, %v392_v36  ;;  %v1001_v45 = vpack.c.bf16 %v403_v40, %v399_v39  ;;  %v398_v46 = vld [vmem:[#allocation5 + $0x380] sm:$0xff]  ;;  %v400_v48 = vld [vmem:[#allocation5 + $0x390] sm:$0xff] }
  0x98   : > { %v402_v47 = vld [vmem:[#allocation5 + $0x3a0] sm:$0xff]  ;;  %v1065_v49 = vpack.c.bf16 %v405_v42, %v401_v41  ;;  %v404_v50 = vld [vmem:[#allocation5 + $0x3b0] sm:$0xff]  ;;  %v407_v51 = vld [vmem:[#allocation5 + $0x3c8] sm:$0xff] }
  0x99   : > { %984 = vmatpush1.bf16.msra.mxu0 %v983_v58  ;;  %v411_v52 = vld [vmem:[#allocation5 + $0x3e8] sm:$0xff]  ;;  %v409_v53 = vld [vmem:[#allocation5 + $0x3d8] sm:$0xff]  ;;  %v1003_v55 = vpack.c.bf16 %v402_v47, %v398_v46  ;;  %v1067_v56 = vpack.c.bf16 %v404_v50, %v400_v48  ;;  %v406_v58 = vld [vmem:[#allocation5 + $0x3c0] sm:$0xff] }
  0x9a   : > { %1048 = vmatpush1.bf16.msra.mxu1 %v1047_v59  ;;  %986 = vmatprep.subr.bf16.mxu0 %v985_v60  ;;  %v413_v54 = vld [vmem:[#allocation5 + $0x3f8] sm:$0xff]  ;;  %v1005_v57 = vpack.c.bf16 %v411_v52, %v407_v51  ;;  %v410_v59 = vld [vmem:[#allocation5 + $0x3e0] sm:$0xff]  ;;  %v408_v60 = vld [vmem:[#allocation5 + $0x3d0] sm:$0xff] }
  0x9b   : > { %1050 = vmatprep.subr.bf16.mxu1 %v1049_v0  ;;  %v1069_v61 = vpack.c.bf16 %v413_v54, %v409_v53  ;;  %v412_v62 = vld [vmem:[#allocation5 + $0x3f0] sm:$0xff]  ;;  %v596_v63 = vld [vmem:[#allocation7 + $0x80] sm:$0xff]  ;;  %v597_v0 = vld [vmem:[#allocation7 + $0x88] sm:$0xff]  ;;  %v1007_v1 = vpack.c.bf16 %v410_v59, %v406_v58 }
  0x9c   : > { %v1071_v2 = vpack.c.bf16 %v412_v62, %v408_v60  ;;  %v1073_v3 = vpack.c.bf16 %v597_v0, %v596_v63  ;;  %v580_v4 = vld [vmem:[#allocation7] sm:$0xff]  ;;  %v581_v5 = vld [vmem:[#allocation7 + $0x8] sm:$0xff]  ;;  %v599_v7 = vld [vmem:[#allocation7 + $0x98] sm:$0xff] }
  0x9d   : > { %988 = vmatpush1.bf16.msra.mxu0 %v987_v6  ;;  %v598_v6 = vld [vmem:[#allocation7 + $0x90] sm:$0xff]  ;;  %v1075_v10 = vpack.c.bf16 %v581_v5, %v580_v4  ;;  %v600_v14 = vld [vmem:[#allocation7 + $0xa0] sm:$0xff]  ;;  %v601_v15 = vld [vmem:[#allocation7 + $0xa8] sm:$0xff] }
  0x9e   : > { %1052 = vmatpush1.bf16.msra.mxu1 %v1051_v8  ;;  %990 = vmatprep.subr.bf16.mxu0 %v989_v9  ;;  %v282_v8 = vld [vmem:[%s1660_s9] sm:$0xff]  ;;  %v285_v9 = vld [vmem:[%s1660_s9 + $0x18] sm:$0xff]  ;;  %v1077_v11 = vpack.c.bf16 %v599_v7, %v598_v6  ;;  %v582_v12 = vld [vmem:[#allocation7 + $0x10] sm:$0xff]  ;;  %v1081_v18 = vpack.c.bf16 %v601_v15, %v600_v14 }
  0x9f   : > { %1054 = vmatprep.subr.bf16.mxu1 %v1053_v13  ;;  %v583_v13 = vld [vmem:[#allocation7 + $0x18] sm:$0xff]  ;;  %v284_v16 = vld [vmem:[%s1660_s9 + $0x10] sm:$0xff]  ;;  %v604_v27 = vld [vmem:[#allocation7 + $0xc0] sm:$0xff] }
  0xa0   : > { %v1079_v17 = vpack.c.bf16 %v583_v13, %v582_v12  ;;  %v603_v22 = vld [vmem:[#allocation7 + $0xb8] sm:$0xff]  ;;  %v605_v28 = vld [vmem:[#allocation7 + $0xc8] sm:$0xff]  ;;  %v608_v39 = vld [vmem:[#allocation7 + $0xe0] sm:$0xff] }
  0xa1   : > { %992 = vmatpush1.bf16.msra.mxu0 %v991_v19  ;;  %v584_v19 = vld [vmem:[#allocation7 + $0x20] sm:$0xff]  ;;  %v587_v26 = vld [vmem:[#allocation7 + $0x38] sm:$0xff]  ;;  %v1089_v30 = vpack.c.bf16 %v605_v28, %v604_v27  ;;  %v609_v40 = vld [vmem:[#allocation7 + $0xe8] sm:$0xff] }
  0xa2   : > { %1056 = vmatpush1.bf16.msra.mxu1 %v1055_v20  ;;  %994 = vmatprep.subr.bf16.mxu0 %v993_v21  ;;  %v585_v20 = vld [vmem:[#allocation7 + $0x28] sm:$0xff]  ;;  %v602_v21 = vld [vmem:[#allocation7 + $0xb0] sm:$0xff]  ;;  %v607_v34 = vld [vmem:[#allocation7 + $0xd8] sm:$0xff]  ;;  %v1097_v42 = vpack.c.bf16 %v609_v40, %v608_v39 }
  0xa3   : > { %1058 = vmatprep.subr.bf16.mxu1 %v1057_v25  ;;  %v1083_v23 = vpack.c.bf16 %v585_v20, %v584_v19  ;;  %v1085_v24 = vpack.c.bf16 %v603_v22, %v602_v21  ;;  %v586_v25 = vld [vmem:[#allocation7 + $0x30] sm:$0xff]  ;;  %v591_v38 = vld [vmem:[#allocation7 + $0x58] sm:$0xff] }
  0xa4   : > { %v1087_v29 = vpack.c.bf16 %v587_v26, %v586_v25  ;;  %v610_v46 = vld [vmem:[#allocation7 + $0xf0] sm:$0xff]  ;;  %v611_v47 = vld [vmem:[#allocation7 + $0xf8] sm:$0xff] }
  0xa5   : > { %996 = vmatpush1.bf16.msra.mxu0 %v995_v31  ;;  %v588_v31 = vld [vmem:[#allocation7 + $0x40] sm:$0xff]  ;;  %v1101_v48 = vpack.c.bf16 %v611_v47, %v610_v46  ;;  %v595_v50 = vld [vmem:[#allocation7 + $0x78] sm:$0xff] }
  0xa6   : > { %1060 = vmatpush1.bf16.msra.mxu1 %v1059_v32  ;;  %998 = vmatprep.subr.bf16.mxu0 %v997_v33  ;;  %v589_v32 = vld [vmem:[#allocation7 + $0x48] sm:$0xff]  ;;  %v606_v33 = vld [vmem:[#allocation7 + $0xd0] sm:$0xff] }
  0xa7   : > { %1062 = vmatprep.subr.bf16.mxu1 %v1061_v37  ;;  %v1091_v35 = vpack.c.bf16 %v589_v32, %v588_v31  ;;  %v1093_v36 = vpack.c.bf16 %v607_v34, %v606_v33  ;;  %v590_v37 = vld [vmem:[#allocation7 + $0x50] sm:$0xff] }
  0xa8   : > { %v1095_v41 = vpack.c.bf16 %v591_v38, %v590_v37 }
  0xa9   : > { %1000 = vmatpush1.bf16.msra.mxu0 %v999_v43  ;;  %v592_v43 = vld [vmem:[#allocation7 + $0x60] sm:$0xff] }
  0xaa   : > { %1064 = vmatpush1.bf16.msra.mxu1 %v1063_v44  ;;  %1002 = vmatprep.subr.bf16.mxu0 %v1001_v45  ;;  %v593_v44 = vld [vmem:[#allocation7 + $0x68] sm:$0xff] }
  0xab   : > { %1066 = vmatprep.subr.bf16.mxu1 %v1065_v49  ;;  %v1099_v45 = vpack.c.bf16 %v593_v44, %v592_v43  ;;  %v594_v49 = vld [vmem:[#allocation7 + $0x70] sm:$0xff] }
  0xac   : > { %v1103_v51 = vpack.c.bf16 %v595_v50, %v594_v49 }
  0xad   : > { %1004 = vmatpush1.bf16.msra.mxu0 %v1003_v55 }
  0xae   : > { %1068 = vmatpush1.bf16.msra.mxu1 %v1067_v56  ;;  %1006 = vmatprep.subr.bf16.mxu0 %v1005_v57 }
  0xaf   : > { %1070 = vmatprep.subr.bf16.mxu1 %v1069_v61 }
  0xb1   : > { %1008 = vmatpush1.bf16.msra.mxu0 %v1007_v1 }
  0xb2   : > { %1072 = vmatpush1.bf16.msra.mxu1 %v1071_v2  ;;  %1074 = vmatprep.subr.bf16.mxu0 %v1073_v3 }
  0xb3   : > { %1105 = vmatprep.subr.bf16.mxu1 %v1073_v3 }
  0xb4   : > { %479 = vmatmul.mubr.f32.vlgmr.msra.gmra.mrb[0].mxu0 %v282_v8 }
  0xb5   : > { %556 = vmatmul.mubr.f32.vlgmr.msra.gmra.mrb[0].mxu1 %v282_v8  ;;  %484 = vmatprep.mubr.f32.mxu0 %v285_v9 }
  0xb6   : > { %561 = vmatprep.mubr.f32.mxu1 %v285_v9  ;;  %1076 = vmatpush3.bf16.msra.mxu0 %v1075_v10 }
  0xb7   : > { %1078 = vmatprep.subr.bf16.mxu0 %v1077_v11  ;;  %1113 = vmatpush3.bf16.msra.mxu1 %v1075_v10 }
  0xb8   : > { %485 = vmatmul.mubr.f32.gmra.mrb[2].mxu0 %v284_v16  ;;  %1106 = vmatprep.subr.bf16.mxu1 %v1077_v11 }
  0xb9   : > { %562 = vmatmul.mubr.f32.gmra.mrb[2].mxu1 %v284_v16 }
  0xba   : > { %1080 = vmatpush3.bf16.msra.mxu0 %v1079_v17 }
  0xbb   : > { %1082 = vmatprep.subr.bf16.mxu0 %v1081_v18  ;;  %1114 = vmatpush3.bf16.msra.mxu1 %v1079_v17 }
  0xbc   : > { %1107 = vmatprep.subr.bf16.mxu1 %v1081_v18 }
  0xbe   : > { %1084 = vmatpush3.bf16.msra.mxu0 %v1083_v23 }
  0xbf   : > { %1086 = vmatprep.subr.bf16.mxu0 %v1085_v24  ;;  %1115 = vmatpush3.bf16.msra.mxu1 %v1083_v23 }
  0xc0   : > { %1108 = vmatprep.subr.bf16.mxu1 %v1085_v24 }
  0xc2   : > { %1088 = vmatpush3.bf16.msra.mxu0 %v1087_v29 }
  0xc3   : > { %1090 = vmatprep.subr.bf16.mxu0 %v1089_v30  ;;  %1116 = vmatpush3.bf16.msra.mxu1 %v1087_v29 }
  0xc4   : > { %1109 = vmatprep.subr.bf16.mxu1 %v1089_v30 }
  0xc6   : > { %1092 = vmatpush3.bf16.msra.mxu0 %v1091_v35 }
  0xc7   : > { %1094 = vmatprep.subr.bf16.mxu0 %v1093_v36  ;;  %1117 = vmatpush3.bf16.msra.mxu1 %v1091_v35 }
  0xc8   : > { %1110 = vmatprep.subr.bf16.mxu1 %v1093_v36 }
  0xca   : > { %1096 = vmatpush3.bf16.msra.mxu0 %v1095_v41 }
  0xcb   : > { %1098 = vmatprep.subr.bf16.mxu0 %v1097_v42  ;;  %1118 = vmatpush3.bf16.msra.mxu1 %v1095_v41 }
  0xcc   : > { %1111 = vmatprep.subr.bf16.mxu1 %v1097_v42 }
  0xce   : > { %1100 = vmatpush3.bf16.msra.mxu0 %v1099_v45 }
  0xcf   : > { %1119 = vmatpush3.bf16.msra.mxu1 %v1099_v45  ;;  %1102 = vmatprep.subr.bf16.mxu0 %v1101_v48 }
  0xd0   : > { %1112 = vmatprep.subr.bf16.mxu1 %v1101_v48 }
  0xd2   : > { %1104 = vmatpush3.bf16.msra.mxu0 %v1103_v51 }
  0xd3   : > { %1120 = vmatpush3.bf16.msra.mxu1 %v1103_v51 }
 0x187   : > { %v480_v52 = vpop.f32.mrb[0].mxu0 }
 0x188   : > { %v568_v53 = vmul.f32 %v480_v52, %v480_v52  ;;  %v557_v54 = vpop.f32.mrb[0].mxu1  ;;  %v482_v55 = vpop.f32.mrb[1].mxu0 }
 0x189   : > { %v572_v56 = vmul.f32 %v557_v54, %v557_v54  ;;  %v569_v57 = vmul.f32 %v482_v55, %v482_v55  ;;  %v559_v58 = vpop.f32.mrb[1].mxu1 }
 0x18a   : > { %v573_v59 = vmul.f32 %v559_v58, %v559_v58 }
 0x18b   : > { %v576_v60 = vadd.f32 %v572_v56, %v568_v53  ;;  %v486_v61 = vpop.f32.mrb[2].mxu0 }
 0x18c   : > { %v577_v62 = vadd.f32 %v573_v59, %v569_v57  ;;  %v570_v63 = vmul.f32 %v486_v61, %v486_v61  ;;  %v563_v0 = vpop.f32.mrb[2].mxu1  ;;  %v488_v1 = vpop.f32.mrb[3].mxu0 }
 0x18d   : > { %v574_v2 = vmul.f32 %v563_v0, %v563_v0  ;;  %v571_v3 = vmul.f32 %v488_v1, %v488_v1  ;;  %v565_v4 = vpop.f32.mrb[3].mxu1 }
 0x18e   : > { %v575_v5 = vmul.f32 %v565_v4, %v565_v4  ;;  %676 = vmatprep.mubr.f32.mxu0 %v577_v62 }
 0x18f   : > { %v578_v6 = vadd.f32 %v574_v2, %v570_v63  ;;  %677 = vmatmul.mubr.f32.vlgmr.msra.gmra.mrb[4].mxu0 %v576_v60 }
 0x190   : > { %v579_v7 = vadd.f32 %v575_v5, %v571_v3 }
 0x192   : > { %681 = vmatprep.mubr.f32.mxu1 %v579_v7 }
 0x193   : > { %682 = vmatmul.mubr.f32.vlgmr.msra.gmra.mrb[4].mxu1 %v578_v6 }
 0x262   : > { %v939_v8 = vpop.f32.mrb[4].mxu0 }
 0x263   : > { %v940_v9 = vpop.f32.mrb[5].mxu0 }
 0x264   : > { %v941_v10 = vadd.f32 %v940_v9, %v939_v8 }
 0x266   : > { %v687_v11 = vmax.f32 %v941_v10, 1e-10  ;;  %v942_v12 = vpop.f32.mrb[4].mxu1 }
 0x267   : > { %v943_v13 = vpop.f32.mrb[5].mxu1 }
 0x268   : > { %1220 = vlog2.f32 %v687_v11  ;;  %v944_v14 = vadd.f32 %v943_v13, %v942_v12 }
 0x26a   : > { %v688_v15 = vmax.f32 %v944_v14, 1e-10 }
 0x26c   : > { %1222 = vlog2.f32 %v688_v15 }
 0x272   : > { %v1221_v16 = vpop.eup %1220 }
 0x273   : > { %v690_v17 = vmul.f32 0.6931472, %v1221_v16 }
 0x275   : > { %v693_v18 = vmul.f32 4.3429446, %v690_v17 }
 0x276   : > { %v1223_v19 = vpop.eup %1222 }
 0x277   : > { %v692_v20 = vmul.f32 0.6931472, %v1223_v19  ;;  %695 = vst [vmem:[%s267_s25] sm:$0xff] %v693_v18 }
 0x279   : > { %v694_v21 = vmul.f32 4.3429446, %v692_v20 }
 0x27b   : > { %696 = vst [vmem:[%s267_s25 + $0x8] sm:$0xff] %v694_v21  ;;  %v698_v22 = vmax.f32 %v693_v18, %v694_v21 }
 0x27d   : > { %699 = vmax.xlane.f32.xlu0 %v698_v22 }
 0x27e   : > { %1323 = shalt.err (!%p1320_p11)
}
 0x27f   : > { %s1324_s10 = scalar_lea.hbm %s1681_s22, 256  ;;  %s1328_s23 = scalar_lea.hbm %s1764_s3, 512 }
 0x280   : > { %p1325_p0 = scmp.ne.s32.totalorder %s1681_s22, %s1324_s10  ;;  %p1329_p6 = scmp.lt.u32.totalorder %s1681_s22, %s1764_s3 }
 0x281   : > { %p1330_p7 = scmp.lt.u32.totalorder %s1328_s23, %s1324_s10  ;;  %p1332_p8 = scmp.lt.u32.totalorder %s1324_s10, %s1681_s22 }
 0x282   : > { %p1326_p4 = pnand %p1325_p0, %p1780_p12 }
 0x283   : > { %p1331_p2 = por %p1330_p7, %p1329_p6 }
 0x284   : > { %p1327_p13 = pneg %p1326_p4 }
 0x285   : > { %p1333_p1 = por %p1332_p8, %p1331_p2 }
 0x287   : > { %p1334_p10 = pnand %p1333_p1, %p1327_p13 }
 0x289   : > { %1337 = shalt.err (!%p1334_p10)
}
 0x28a   : > { %s1440_s14 = smov 128   ;;  %s1441_s21 = smov 8  }
 0x28b   : > { %1133 = dma.vmem_to_hbm [thread:$0]  (%p1780_p12), %s1675_s27, 256, %s1681_s22, %s712_s13, %s1440_s14, %s1440_s14, %s1441_s21  }
 0x28c   : > { %s897_s24 = sshll.u32 %s1656_s6, 3  ;;  %s902_s7 = sshll.u32 %s1420_s18, 7 }
 0x28d   : > { %s274_s28 = scalar_lea.vmem [#allocation9], %s897_s24  ;;  %s1712_s27 = scalar_lea.hbm %s1765_s4, %s902_s7 }
 0x28e   : > { %s748_s30 = sshll.u32 %s274_s28, 4  ;;  %s717_s22 = scalar_lea.sflag [#allocation10], %s1656_s6  ;;  %s1714_s30 = int_to_ptr.vmem [resolvable:$true] %s748_s30 }
 0x28f   : > { %s1338_s13 = scalar_lea.vmem %s1714_s30, 128  ;;  %s1442_s18 = smov [#allocation9]  }
 0x290   : > { %p1339_p3 = scmp.ne.s32.totalorder %s1714_s30, %s1338_s13  ;;  %s1342_s23 = sshll.u32 %s1442_s18, 4  ;;  %s1343_s23 = int_to_ptr.vmem [resolvable:$false] %s1342_s23 }
 0x291   : > { %s1344_s25 = scalar_lea.vmem %s1343_s23, 256  ;;  %p1345_p11 = scmp.lt.s32.totalorder %s1714_s30, %s1343_s23 }
 0x292   : > { %p1340_p5 = pnand %p1339_p3, %p1780_p12  ;;  %p1346_p0 = scmp.lt.s32.totalorder %s1344_s25, %s1338_s13 }
 0x294   : > { %p1341_p9 = pneg %p1340_p5  ;;  %p1347_p4 = por %p1346_p0, %p1345_p11 }
 0x296   : > { %p1348_p13 = pnand %p1347_p4, %p1341_p9 }
 0x30a   : > { %v700_v23 = vpop.xlane.xlu0 %699 }
 0x30b   : > { %v701_v24 = vrot.slane %v700_v23, 4 }
 0x30d   : > { %v702_v25 = vmax.f32 %v700_v23, %v701_v24 }
 0x30f   : > { %v703_v26 = vrot.slane %v702_v25, 2 }
 0x311   : > { %v704_v27 = vmax.f32 %v702_v25, %v703_v26 }
 0x313   : > { %v705_v28 = vrot.slane %v704_v27, 1 }
 0x315   : > { %v706_v29 = vmax.f32 %v704_v27, %v705_v28 }
 0x317   : > { %1121 = vpush %v706_v29 }
 0x348   : > { %s1122_s10 = spop %1121 }
 0x349   : > { %v708_v30 = vstv %s1122_s10 }
 0x34a   : > { %710 = vst [vmem:[%s274_s28] sm:$0xff] %v708_v30 }
 0x34b   : > { %1351 = shalt.err (!%p1348_p13)
}
 0x34c   : > { %s1352_s6 = scalar_lea.hbm %s1712_s27, 128  ;;  %s1356_s21 = scalar_lea.hbm %s1765_s4, 256 }
 0x34d   : > { %p1353_p6 = scmp.ne.s32.totalorder %s1712_s27, %s1352_s6  ;;  %p1357_p8 = scmp.lt.u32.totalorder %s1712_s27, %s1765_s4 }
 0x34e   : > { %p1358_p1 = scmp.lt.u32.totalorder %s1356_s21, %s1352_s6  ;;  %p1360_p3 = scmp.lt.u32.totalorder %s1352_s6, %s1712_s27 }
 0x34f   : > { %p1354_p7 = pnand %p1353_p6, %p1780_p12 }
 0x350   : > { %p1359_p10 = por %p1358_p1, %p1357_p8 }
 0x351   : > { %p1355_p2 = pneg %p1354_p7 }
 0x352   : > { %p1361_p5 = por %p1360_p3, %p1359_p10 }
 0x354   : > { %p1362_p9 = pnand %p1361_p5, %p1355_p2 }
 0x356   : > { %1365 = shalt.err (!%p1362_p9)
}
 0x357   : > { %1134 = dma.vmem_to_hbm [thread:$0]  (%p1780_p12), %s1714_s30, 128, %s1712_s27, %s717_s22  }
 0x358 PF: > { %s760_s28 = sand.u32 1, %s1408_s15   ;;  %p1781_p11 = scmp.ne.s32.totalorder %s1773_s26, 0 }
 0x359   : > { %p1782_p0 = scmp.ge.s32.totalorder %s1428_s20, 2  ;;  %s761_s10 = scalar_lea.sflag [#allocation4], %s760_s28 }
 0x35b   : > { %p1149_p4 = pnand %p1782_p0, %p1781_p11 }
 0x35d   : > { %1399 = dma.done.wait (!%p1149_p4), %s761_s10, 256  }
 0x35e   : > { %1401 = vsyncadd (!%p1149_p4), %s761_s10, 4294967040  ;;  %s770_s12 = scalar_lea.sflag [#allocation10], %s760_s28 }
 0x35f   : > { %1403 = dma.done.wait (!%p1149_p4), %s770_s12, 128  }
 0x360   : > { %1405 = vsyncadd (!%p1149_p4), %s770_s12, 4294967168  ;;  %s25_s20 = sadd.s32 1, %s1428_s20   ;;  %s1783_s15 = smov %s1412_s16 }
 0x361   : > { %p22_p13 = scmp.ge.s32.totalorder %s25_s20, 4   ;;  %s1784_s16 = smov %s1416_s17 }
 0x362   : > { %s1785_s17 = smov %s1610_s11  ;;  %s1786_s18 = smov %s1424_s19 }
 0x363   : > { %s1787_s19 = smov %s1789_s5  ;;  %24 = sbr.rel (!%p22_p13) target bundleno = 9 (0x9), region = 106 }
 0x36a   :  { %775 = vsyncpa [#allocation3], 1 }
 0x36b   :  { %777 = vsyncpa [#allocation3 + $0x1], 1 }
 0x36c   :  { %778 = vsyncpa [#allocation6], 1 }
 0x36d   :  { %779 = vsyncpa [#allocation4], 1 }
 0x36e   :  { %781 = vsyncpa [#allocation4 + $0x1], 1 }
 0x36f   :  { %782 = vsyncpa [#allocation10], 1 }
 0x370   :  { %784 = vsyncpa [#allocation10 + $0x1], 1 }

</bundles_post_ra>
